<compile_context>
chip_gen: v6e
topology: v6e:2x2x1
jax: 0.10.0
libtpu: 0.0.40
codegen_flags: <defaults>
</compile_context>

<pallas_src>
import math

import jax
import jax.numpy as jnp
from jax.experimental import pallas as pl
from jax.experimental.pallas import tpu as pltpu

_LANE = 128   # lane width / padded output width
_OUT = 10     # MNIST classes
_NEG = -1e30  # finite "minus infinity" for padded logit lanes


def _round_up(x, m):
    return (x + m - 1) // m * m


def _pick_tb(bpad, tb_max):
    """Largest multiple-of-8 divisor of bpad that is <= tb_max, preferring a
    grid of >= 2 steps so the ('parallel',) batch axis can shard across both
    v7x TensorCores."""
    cap = min(tb_max, bpad // 2) if bpad >= 16 else min(tb_max, bpad)
    cap = max(8, cap - cap % 8)
    best = 8
    d = 8
    while d <= cap:
        if bpad % d == 0:
            best = d
        d += 8
    return best


# ---------------------------------------------------------------------------
# Fused MLP kernel factory
# ---------------------------------------------------------------------------

def _make_fused_mlp_kernel(num_layers):
    """Fused kernel: (num_layers-1) x [linear + sigmoid] + linear + log_softmax.

    Ref layout: (x_ref, w0, b0, w1, b1, ..., w_{n-1}, b_{n-1}, o_ref).
    x and w refs are bf16 (MXU operands); biases are f32 (1, out) rows.
    The last weight is zero-padded and the last bias is padded with -1e30 up to
    128 lanes, so padded lanes fall out of the (stable) log_softmax exactly.
    """

    def kernel(*refs):
        x_ref = refs[0]
        o_ref = refs[-1]
        wb = refs[1:-1]

        h = x_ref[...]  # bf16 tile straight into the MXU

        # Hidden layers: sigmoid in f32, recast to bf16 for the next matmul.
        for i in range(num_layers - 1):
            w_ref = wb[2 * i]
            b_ref = wb[2 * i + 1]
            y = jnp.dot(h, w_ref[...], preferred_element_type=jnp.float32)
            h = jax.nn.sigmoid(y + b_ref[...]).astype(jnp.bfloat16)

        # Final layer: lane-padded logits (padded lanes ~= -1e30 via the bias).
        w_ref = wb[2 * (num_layers - 1)]
        b_ref = wb[2 * (num_layers - 1) + 1]
        logits = jnp.dot(h, w_ref[...], preferred_element_type=jnp.float32)
        logits = logits + b_ref[...]

        # Numerically stable log_softmax (all f32 VPU/EUP work).
        m = jnp.max(logits, axis=-1, keepdims=True)
        z = logits - m
        lse = jnp.log(jnp.sum(jnp.exp(z), axis=-1, keepdims=True))
        o_ref[...] = (z - lse).astype(o_ref.dtype)

    return kernel


# ---------------------------------------------------------------------------
# Parameter init (matches meProp Linear.reset_parameters: uniform(-stdv, stdv),
# stdv = 1 / sqrt(out_features); w is [in, out], b is [out])
# ---------------------------------------------------------------------------

def init_linear_params(key, in_, out_):
    stdv = 1.0 / math.sqrt(out_)
    kw, kb = jax.random.split(key)
    w = jax.random.uniform(kw, (in_, out_), jnp.float32, -stdv, stdv)
    b = jax.random.uniform(kb, (out_,), jnp.float32, -stdv, stdv)
    return w, b


def init_netlayer_params(key, hidden, layer):
    """Same layer stack as NetLayer._create (dropout=None)."""
    assert layer >= 2, "layer == 1 path in the reference code is malformed"
    params = []
    keys = jax.random.split(key, layer)
    for i in range(layer):
        if i == 0:
            params.append(init_linear_params(keys[i], 784, hidden))
        elif i == layer - 1:
            params.append(init_linear_params(keys[i], hidden, 10))
        else:
            params.append(init_linear_params(keys[i], hidden, hidden))
    return params


# ---------------------------------------------------------------------------
# NetLayer forward (single fused, batch-tiled pallas_call)
# ---------------------------------------------------------------------------

def _netlayer_forward_impl(x, params, *, tb=512):
    # x: [B, 1, 28, 28] (NCHW) or already [B, 784]
    h = x.reshape(-1, 784)  # same as torch .view(-1, 784)
    B, In = h.shape
    n = len(params)

    # 8-align the batch (at most 7 pad rows), then pick a tile that divides it
    # exactly so no further full-batch pad copy is ever materialized.
    Bpad = _round_up(B, 8)
    if Bpad != B:
        h = jnp.pad(h, ((0, Bpad - B), (0, 0)))
    tb = _pick_tb(Bpad, max(8, tb))

    # bf16 MXU operand for x (reshape/pad/convert fuse into one XLA op).
    h = h.astype(jnp.bfloat16)

    out_pad = _LANE  # lane-dense output buffer

    # Build flat input list + BlockSpecs. x/out are batch-tiled; weights/biases
    # use a constant block index so they stay VMEM-resident across grid steps.
    flat_inputs = [h]
    in_specs = [pl.BlockSpec((tb, In), lambda i: (i, 0))]
    for li, (w, b) in enumerate(params):
        if li == n - 1:
            pad = out_pad - w.shape[1]
            w = jnp.pad(w, ((0, 0), (0, pad)))                      # zero cols
            b = jnp.pad(b, ((0, pad),), constant_values=_NEG)       # -1e30 lanes
        wb16 = w.astype(jnp.bfloat16)     # MXU operand
        b2 = b.reshape(1, -1)             # f32 bias row (post-matmul add)
        flat_inputs += [wb16, b2]
        in_specs += [
            pl.BlockSpec(wb16.shape, lambda i: (0, 0)),
            pl.BlockSpec(b2.shape, lambda i: (0, 0)),
        ]
    out_specs = pl.BlockSpec((tb, out_pad), lambda i: (i, 0))
    grid = (Bpad // tb,)

    # Advisory cost estimate for XLA's scheduler.
    flops = 0
    prev = In
    for (w, _) in params:
        flops += 2 * Bpad * prev * w.shape[1]
        prev = w.shape[1]
    transcendentals = Bpad * (sum(w.shape[1] for w, _ in params[:-1]) + out_pad)
    bytes_accessed = sum(a.size * a.dtype.itemsize for a in flat_inputs) \
        + 4 * Bpad * out_pad

    kernel = _make_fused_mlp_kernel(n)
    out = pl.pallas_call(
        kernel,
        out_shape=jax.ShapeDtypeStruct((Bpad, out_pad), jnp.float32),
        grid=grid,
        in_specs=in_specs,
        out_specs=out_specs,
        compiler_params=pltpu.CompilerParams(
            dimension_semantics=("parallel",)),
        cost_estimate=pl.CostEstimate(
            flops=flops,
            transcendentals=transcendentals,
            bytes_accessed=bytes_accessed),
    )(*flat_inputs)

    # Module semantics: [B, 10] log-probs. (A loss-fused variant would avoid
    # this slice entirely by consuming the padded buffer directly.)
    return out[:B, :_OUT]


netlayer_forward = jax.jit(_netlayer_forward_impl, static_argnames=("tb",))


# ---------------------------------------------------------------------------
# References for sanity checking
# ---------------------------------------------------------------------------

def netlayer_forward_ref(x, params):
    """Pure f32 reference (matches the PyTorch module numerics)."""
    h = x.reshape(-1, 784)
    n = len(params)
    for i, (w, b) in enumerate(params):
        h = h @ w + b
        if i < n - 1:
            h = jax.nn.sigmoid(h)
    return jax.nn.log_softmax(h, axis=-1)


def netlayer_forward_ref_bf16(x, params):
    """Reference with the same bf16-operand / f32-accumulate mixed precision."""
    h = x.reshape(-1, 784).astype(jnp.bfloat16)
    n = len(params)
    for i, (w, b) in enumerate(params):
        y = jnp.dot(h, w.astype(jnp.bfloat16),
                    preferred_element_type=jnp.float32) + b
        if i < n - 1:
            h = jax.nn.sigmoid(y).astype(jnp.bfloat16)
        else:
            h = y
    return jax.nn.log_softmax(h, axis=-1)


if __name__ == "__main__":
    key = jax.random.PRNGKey(0)
    k_x, k_p = jax.random.split(key)

    batch, hidden, layer = 64, 32, 3
    x = jax.random.normal(k_x, (batch, 1, 28, 28), jnp.float32)  # NCHW MNIST-like
    params = init_netlayer_params(k_p, hidden, layer)

    # Default tb=512 is capped to Bpad//2 -> tb=32, grid=(2,): exercises batch
    # tiling / pipelining / dual-core sharding even at this small batch.
    out = netlayer_forward(x, params)
    out = jax.block_until_ready(out)
    assert out.shape == (batch, 10), out.shape
    assert jnp.all(jnp.isfinite(out))

    # Tight check against a mixed-precision (bf16 operand) reference.
    ref_bf16 = netlayer_forward_ref_bf16(x, params)
    assert jnp.allclose(out, ref_bf16, atol=2e-3, rtol=2e-3), (
        float(jnp.max(jnp.abs(out - ref_bf16))))

    # Loose check against the exact f32 reference (bf16 operand rounding).
    ref_f32 = netlayer_forward_ref(x, params)
    assert jnp.allclose(out, ref_f32, atol=5e-2, rtol=5e-2), (
        float(jnp.max(jnp.abs(out - ref_f32))))

    print("KERNEL_OK")
</pallas_src>

<mosaic_0001>
module attributes {stable_mosaic.version = 11 : i64} {
  func.func @kernel(%arg0: i32, %arg1: memref<32x784xbf16, #tpu.memory_space<vmem>>, %arg2: memref<784x32xbf16, #tpu.memory_space<vmem>>, %arg3: memref<1x32xf32, #tpu.memory_space<vmem>>, %arg4: memref<32x32xbf16, #tpu.memory_space<vmem>>, %arg5: memref<1x32xf32, #tpu.memory_space<vmem>>, %arg6: memref<32x128xbf16, #tpu.memory_space<vmem>>, %arg7: memref<1x128xf32, #tpu.memory_space<vmem>>, %arg8: memref<32x128xf32, #tpu.memory_space<vmem>>) attributes {dimension_semantics = [#tpu.dimension_semantics<parallel>], iteration_bounds = array<i64: 2>, scalar_prefetch = 0 : i64, scratch_operands = 0 : i64, tpu.core_type = #tpu.core_type<tc>, window_params = [{transform_indices = @transform_0, window_bounds = array<i64: 32, 784>}, {pipeline_mode = #tpu.pipeline_mode<synchronous>, transform_indices = @transform_1, window_bounds = array<i64: 784, 32>}, {pipeline_mode = #tpu.pipeline_mode<synchronous>, transform_indices = @transform_2, window_bounds = array<i64: 1, 32>}, {pipeline_mode = #tpu.pipeline_mode<synchronous>, transform_indices = @transform_3, window_bounds = array<i64: 32, 32>}, {pipeline_mode = #tpu.pipeline_mode<synchronous>, transform_indices = @transform_4, window_bounds = array<i64: 1, 32>}, {pipeline_mode = #tpu.pipeline_mode<synchronous>, transform_indices = @transform_5, window_bounds = array<i64: 32, 128>}, {pipeline_mode = #tpu.pipeline_mode<synchronous>, transform_indices = @transform_6, window_bounds = array<i64: 1, 128>}, {transform_indices = @transform_7, window_bounds = array<i64: 32, 128>}]} {
    %c0 = arith.constant 0 : index
    %c0_0 = arith.constant 0 : index
    %0 = vector.load %arg1[%c0, %c0_0] : memref<32x784xbf16, #tpu.memory_space<vmem>>, vector<32x784xbf16>
    %c0_1 = arith.constant 0 : index
    %c0_2 = arith.constant 0 : index
    %1 = vector.load %arg2[%c0_1, %c0_2] : memref<784x32xbf16, #tpu.memory_space<vmem>>, vector<784x32xbf16>
    %cst = arith.constant dense<0.000000e+00> : vector<32x32xf32>
    %2 = tpu.matmul %0, %1, %cst {dimension_numbers = #tpu.dot_dimension_numbers<[1], [0], [0], [1], [0, 0, 1, 1], [], []>} : vector<32x784xbf16>, vector<784x32xbf16>, vector<32x32xf32> -> vector<32x32xf32>
    %c0_3 = arith.constant 0 : index
    %c0_4 = arith.constant 0 : index
    %3 = vector.load %arg3[%c0_3, %c0_4] : memref<1x32xf32, #tpu.memory_space<vmem>>, vector<1x32xf32>
    %4 = vector.broadcast %3 : vector<1x32xf32> to vector<32x32xf32>
    %5 = arith.addf %2, %4 : vector<32x32xf32>
    %6 = arith.negf %5 : vector<32x32xf32>
    %7 = math.exp %6 : vector<32x32xf32>
    %cst_5 = arith.constant 1.000000e+00 : f32
    %8 = vector.broadcast %cst_5 : f32 to vector<32x32xf32>
    %9 = arith.addf %8, %7 : vector<32x32xf32>
    %10 = arith.divf %8, %9 : vector<32x32xf32>
    %11 = arith.truncf %10 : vector<32x32xf32> to vector<32x32xbf16>
    %c0_6 = arith.constant 0 : index
    %c0_7 = arith.constant 0 : index
    %12 = vector.load %arg4[%c0_6, %c0_7] : memref<32x32xbf16, #tpu.memory_space<vmem>>, vector<32x32xbf16>
    %cst_8 = arith.constant dense<0.000000e+00> : vector<32x32xf32>
    %13 = tpu.matmul %11, %12, %cst_8 {dimension_numbers = #tpu.dot_dimension_numbers<[1], [0], [0], [1], [0, 0, 1, 1], [], []>} : vector<32x32xbf16>, vector<32x32xbf16>, vector<32x32xf32> -> vector<32x32xf32>
    %c0_9 = arith.constant 0 : index
    %c0_10 = arith.constant 0 : index
    %14 = vector.load %arg5[%c0_9, %c0_10] : memref<1x32xf32, #tpu.memory_space<vmem>>, vector<1x32xf32>
    %15 = vector.broadcast %14 : vector<1x32xf32> to vector<32x32xf32>
    %16 = arith.addf %13, %15 : vector<32x32xf32>
    %17 = arith.negf %16 : vector<32x32xf32>
    %18 = math.exp %17 : vector<32x32xf32>
    %cst_11 = arith.constant 1.000000e+00 : f32
    %19 = vector.broadcast %cst_11 : f32 to vector<32x32xf32>
    %20 = arith.addf %19, %18 : vector<32x32xf32>
    %21 = arith.divf %19, %20 : vector<32x32xf32>
    %22 = arith.truncf %21 : vector<32x32xf32> to vector<32x32xbf16>
    %c0_12 = arith.constant 0 : index
    %c0_13 = arith.constant 0 : index
    %23 = vector.load %arg6[%c0_12, %c0_13] : memref<32x128xbf16, #tpu.memory_space<vmem>>, vector<32x128xbf16>
    %cst_14 = arith.constant dense<0.000000e+00> : vector<32x128xf32>
    %24 = tpu.matmul %22, %23, %cst_14 {dimension_numbers = #tpu.dot_dimension_numbers<[1], [0], [0], [1], [0, 0, 1, 1], [], []>} : vector<32x32xbf16>, vector<32x128xbf16>, vector<32x128xf32> -> vector<32x128xf32>
    %c0_15 = arith.constant 0 : index
    %c0_16 = arith.constant 0 : index
    %25 = vector.load %arg7[%c0_15, %c0_16] : memref<1x128xf32, #tpu.memory_space<vmem>>, vector<1x128xf32>
    %26 = vector.broadcast %25 : vector<1x128xf32> to vector<32x128xf32>
    %27 = arith.addf %24, %26 : vector<32x128xf32>
    %cst_17 = arith.constant dense<0xFF800000> : vector<32xf32>
    %28 = vector.multi_reduction <maximumf>, %27, %cst_17 [1] : vector<32x128xf32> to vector<32xf32>
    %29 = vector.shape_cast %28 : vector<32xf32> to vector<32x1xf32>
    %30 = vector.broadcast %29 : vector<32x1xf32> to vector<32x128xf32>
    %31 = arith.subf %27, %30 : vector<32x128xf32>
    %32 = math.exp %31 : vector<32x128xf32>
    %cst_18 = arith.constant dense<0.000000e+00> : vector<32xf32>
    %33 = vector.multi_reduction <add>, %32, %cst_18 [1] : vector<32x128xf32> to vector<32xf32>
    %34 = vector.shape_cast %33 : vector<32xf32> to vector<32x1xf32>
    %35 = math.log %34 : vector<32x1xf32>
    %36 = vector.broadcast %35 : vector<32x1xf32> to vector<32x128xf32>
    %37 = arith.subf %31, %36 : vector<32x128xf32>
    %c0_19 = arith.constant 0 : index
    %c0_20 = arith.constant 0 : index
    %38 = vector.load %arg8[%c0_19, %c0_20] : memref<32x128xf32, #tpu.memory_space<vmem>>, vector<32x128xf32>
    tpu.vector_store %arg8[%c0_19, %c0_20], %37 {strides = array<i32>} : memref<32x128xf32, #tpu.memory_space<vmem>>, vector<32x128xf32>,
    return
  }
  func.func @transform_0(%arg0: i32) -> (i32, i32) {
    %c0_i32 = arith.constant 0 : i32
    %c0_i32_0 = arith.constant 0 : i32
    return %arg0, %c0_i32 : i32, i32
  }
  func.func @transform_1(%arg0: i32) -> (i32, i32) {
    %c0_i32 = arith.constant 0 : i32
    %c0_i32_0 = arith.constant 0 : i32
    %c0_i32_1 = arith.constant 0 : i32
    return %c0_i32, %c0_i32_0 : i32, i32
  }
  func.func @transform_2(%arg0: i32) -> (i32, i32) {
    %c0_i32 = arith.constant 0 : i32
    %c0_i32_0 = arith.constant 0 : i32
    %c0_i32_1 = arith.constant 0 : i32
    return %c0_i32, %c0_i32_0 : i32, i32
  }
  func.func @transform_3(%arg0: i32) -> (i32, i32) {
    %c0_i32 = arith.constant 0 : i32
    %c0_i32_0 = arith.constant 0 : i32
    %c0_i32_1 = arith.constant 0 : i32
    return %c0_i32, %c0_i32_0 : i32, i32
  }
  func.func @transform_4(%arg0: i32) -> (i32, i32) {
    %c0_i32 = arith.constant 0 : i32
    %c0_i32_0 = arith.constant 0 : i32
    %c0_i32_1 = arith.constant 0 : i32
    return %c0_i32, %c0_i32_0 : i32, i32
  }
  func.func @transform_5(%arg0: i32) -> (i32, i32) {
    %c0_i32 = arith.constant 0 : i32
    %c0_i32_0 = arith.constant 0 : i32
    %c0_i32_1 = arith.constant 0 : i32
    return %c0_i32, %c0_i32_0 : i32, i32
  }
  func.func @transform_6(%arg0: i32) -> (i32, i32) {
    %c0_i32 = arith.constant 0 : i32
    %c0_i32_0 = arith.constant 0 : i32
    %c0_i32_1 = arith.constant 0 : i32
    return %c0_i32, %c0_i32_0 : i32, i32
  }
  func.func @transform_7(%arg0: i32) -> (i32, i32) {
    %c0_i32 = arith.constant 0 : i32
    %c0_i32_0 = arith.constant 0 : i32
    return %arg0, %c0_i32 : i32, i32
  }
}

</mosaic_0001>

<bundles_post_ra>
// kernel: _netlayer_forward_impl.1
= control target key start
LH: loop header
LB: loop body
LE: loop exit
PB: predicated region body
PF: predicated region fallthrough
CT: control target
= control target key end

     0   :  { %s1673_s24 = smov 0   ;;  %s1884_s0 = inlined_call_operand.vmem [shape: bf16[64,784], index: 0, kind: input, shape index: {}]   ;;  %s1885_s1 = inlined_call_operand.vmem [shape: bf16[784,32], index: 1, kind: input, shape index: {}]   ;;  %s1886_s2 = inlined_call_operand.vmem [shape: f32[1,32], index: 2, kind: input, shape index: {}]   ;;  %s1887_s3 = inlined_call_operand.vmem [shape: bf16[32,32], index: 3, kind: input, shape index: {}]   ;;  %s1888_s4 = inlined_call_operand.vmem [shape: f32[1,32], index: 4, kind: input, shape index: {}]   ;;  %s1889_s5 = inlined_call_operand.vmem [shape: bf16[32,128], index: 5, kind: input, shape index: {}]   ;;  %s1890_s6 = inlined_call_operand.vmem [shape: f32[1,128], index: 6, kind: input, shape index: {}]   ;;  %s1891_s7 = inlined_call_operand.vmem [shape: f32[64,128], index: 7, kind: output, shape index: {}]  }
   0x1 LB: > { %s1283_s25 = sadd.s32 4294967295, %s1631_s24   ;;  %p1287_p0 = scmp.ge.s32.totalorder %s1631_s24, 1  ;;  %s1631_s24 = sphi %s1673_s24, %s17_s24  }
   0x2   : > { %p239_p1 = scmp.lt.s32.totalorder %s1631_s24, 3 }
   0x4   : > { %p240_p2 = pnand %p1287_p0, %p239_p1 }
   0x5   : > { %s1288_s10 = sshll.u32 (!%p240_p2), %s1283_s25, 2 }
   0x6   : > { %243 = sbr.rel (%p240_p2) target bundleno = 1077 (0x435), region = 48  ;;  %p273_p3 = scmp.lt.s32.totalorder (!%p240_p2), %s1288_s10, 7 }
   0xb   : > { %v1504_v0 = vld [vmem:[%s1885_s1 + $0x78] sm:$0xff]   ;;  %v1508_v4 = vld [vmem:[%s1885_s1 + $0x70] sm:$0xff]   ;;  %v1512_v8 = vld [vmem:[%s1885_s1 + $0x68] sm:$0xff]   ;;  %s1893_s10 = smov (!%p273_p3, %s1288_s10), 7  ;;  %vm771_vm0 = vcmask 130048   ;;  %vm1023_vm1 = vcmask 261120  }
   0xc   : > { %v1505_v1 = vld [vmem:[%s1885_s1 + $0x38] sm:$0xff]   ;;  %1378 = vmatprep.subr.bf16.mxu0 %v1504_v0  ;;  %v1509_v5 = vld [vmem:[%s1885_s1 + $0x30] sm:$0xff]   ;;  %v1513_v9 = vld [vmem:[%s1885_s1 + $0x28] sm:$0xff]   ;;  %s1495_s12 = smul.u32 28, %s1893_s10  ;;  %s1291_s16 = sshll.u32 %s1893_s10, 3 }
   0xd   : > { %v1506_v2 = vld [vmem:[%s1885_s1 + $0xf8] sm:$0xff]   ;;  %1379 = vmatpush3.bf16.msra.mxu0 %v1505_v1  ;;  %v1510_v6 = vld [vmem:[%s1885_s1 + $0xf0] sm:$0xff]   ;;  %v1514_v10 = vld [vmem:[%s1885_s1 + $0xe8] sm:$0xff]   ;;  %s283_s25 = scalar_lea.vmem %s1891_s7, %s1291_s16 }
   0xe   : > { %v1507_v3 = vld [vmem:[%s1885_s1 + $0xb8] sm:$0xff]   ;;  %1406 = vmatprep.subr.bf16.mxu1 %v1506_v2  ;;  %1380 = vmatprep.subr.bf16.mxu0 %v1508_v4  ;;  %v1511_v7 = vld [vmem:[%s1885_s1 + $0xb0] sm:$0xff]   ;;  %v1515_v11 = vld [vmem:[%s1885_s1 + $0xa8] sm:$0xff]   ;;  %s1776_s22 = scalar_lea.vmem %s1884_s0, %s1495_s12 }
   0xf   : > { %1407 = vmatpush3.bf16.msra.mxu1 %v1507_v3  ;;  %v1516_v12 = vld [vmem:[%s1885_s1 + $0x60] sm:$0xff]   ;;  %v1520_v16 = vld [vmem:[%s1885_s1 + $0x58] sm:$0xff]   ;;  %v1524_v20 = vld [vmem:[%s1885_s1 + $0x50] sm:$0xff]  }
  0x10   : > { %1408 = vmatprep.subr.bf16.mxu1 %v1510_v6  ;;  %v1517_v13 = vld [vmem:[%s1885_s1 + $0x20] sm:$0xff]   ;;  %v1521_v17 = vld [vmem:[%s1885_s1 + $0x18] sm:$0xff]   ;;  %v1525_v21 = vld [vmem:[%s1885_s1 + $0x10] sm:$0xff]  }
  0x11   : > { %1381 = vmatpush3.bf16.msra.mxu0 %v1509_v5  ;;  %v1518_v14 = vld [vmem:[%s1885_s1 + $0xe0] sm:$0xff]   ;;  %v1522_v18 = vld [vmem:[%s1885_s1 + $0xd8] sm:$0xff]   ;;  %v1526_v22 = vld [vmem:[%s1885_s1 + $0xd0] sm:$0xff]  }
  0x12   : > { %1382 = vmatprep.subr.bf16.mxu0 %v1512_v8  ;;  %v1519_v15 = vld [vmem:[%s1885_s1 + $0xa0] sm:$0xff]   ;;  %v1523_v19 = vld [vmem:[%s1885_s1 + $0x98] sm:$0xff]   ;;  %v1527_v23 = vld [vmem:[%s1885_s1 + $0x90] sm:$0xff]  }
  0x13   : > { %1409 = vmatpush3.bf16.msra.mxu1 %v1511_v7  ;;  %v1528_v24 = vld [vmem:[%s1885_s1 + $0x48] sm:$0xff]   ;;  %v1532_v28 = vld [vmem:[%s1885_s1 + $0x40] sm:$0xff]   ;;  %v1539_v34 = vld [vmem:[%s1885_s1 + $0x178] sm:$0xff]  }
  0x14   : > { %1410 = vmatprep.subr.bf16.mxu1 %v1514_v10  ;;  %v1529_v25 = vld [vmem:[%s1885_s1 + $0x8] sm:$0xff]   ;;  %v1533_v29 = vld [vmem:[%s1885_s1] sm:$0xff]   ;;  %v1543_v37 = vld [vmem:[%s1885_s1 + $0x138] sm:$0xff]  }
  0x15   : > { %1383 = vmatpush3.bf16.msra.mxu0 %v1513_v9  ;;  %v1530_v26 = vld [vmem:[%s1885_s1 + $0xc8] sm:$0xff]   ;;  %v1534_v30 = vld [vmem:[%s1885_s1 + $0xc0] sm:$0xff]   ;;  %v1544_v38 = vld [vmem:[%s1885_s1 + $0x170] sm:$0xff]  }
  0x16   : > { %1384 = vmatprep.subr.bf16.mxu0 %v1516_v12  ;;  %v1531_v27 = vld [vmem:[%s1885_s1 + $0x88] sm:$0xff]   ;;  %v1535_v31 = vld [vmem:[%s1776_s22] ss:$28 sps:$4 sm:$0xff]   ;;  %v1545_v39 = vld [vmem:[%s1885_s1 + $0x130] sm:$0xff]  }
  0x17   : > { %1411 = vmatpush3.bf16.msra.mxu1 %v1515_v11  ;;  %v1537_v32 = vld [vmem:[%s1776_s22 + $0x4] ss:$28 sps:$4 sm:$0xff]   ;;  %v1542_v36 = vld [vmem:[%s1776_s22 + $0xc] ss:$28 sps:$4 sm:$0xff]   ;;  %v1551_v44 = vld [vmem:[%s1776_s22 + $0x3c] ss:$28 sps:$4 sm:$0xff]  }
  0x18   : > { %1412 = vmatprep.subr.bf16.mxu1 %v1518_v14  ;;  %v1538_v33 = vld [vmem:[%s1885_s1 + $0x80] sm:$0xff]   ;;  %810 = vmatprep.mubr.bf16.mxu0 %v1537_v32  ;;  %v1546_v40 = vld [vmem:[%s1885_s1 + $0x168] sm:$0xff]   ;;  %v1550_v45 = vld [vmem:[%s1885_s1 + $0x158] sm:$0xff]  }
  0x19   : > { %1385 = vmatpush3.bf16.msra.mxu0 %v1517_v13  ;;  %v1540_v35 = vld [vmem:[%s1776_s22 + $0x8] ss:$28 sps:$4 sm:$0xff]   ;;  %859 = vmatprep.mubr.bf16.mxu1 %v1542_v36  ;;  %v1554_v46 = vld [vmem:[%s1776_s22 + $0x38] ss:$28 sps:$4 sm:$0xff]   ;;  %v1557_v48 = vld [vmem:[%s1776_s22 + $0x40] ss:$28 sps:$4 sm:$0xff]  }
  0x1a   : > { %1386 = vmatprep.subr.bf16.mxu0 %v1520_v16  ;;  %v1547_v41 = vld [vmem:[%s1885_s1 + $0x128] sm:$0xff]   ;;  %v1548_v42 = vld [vmem:[%s1885_s1 + $0x160] sm:$0xff]   ;;  %v1553_v49 = vld [vmem:[%s1885_s1 + $0x118] sm:$0xff]  }
  0x1b   : > { %1413 = vmatpush3.bf16.msra.mxu1 %v1519_v15  ;;  %v1549_v43 = vld [vmem:[%s1885_s1 + $0x120] sm:$0xff]   ;;  %v1558_v50 = vld [vmem:[%s1885_s1 + $0x150] sm:$0xff]   ;;  %v1560_v53 = vld [vmem:[%s1885_s1 + $0x148] sm:$0xff]  }
  0x1c   : > { %1414 = vmatprep.subr.bf16.mxu1 %v1522_v18  ;;  %v1555_v47 = vld [vmem:[%s1776_s22 + $0x44] ss:$28 sps:$4 sm:$0xff]   ;;  %v1559_v52 = vld [vmem:[%s1885_s1 + $0x110] sm:$0xff]   ;;  %v1561_v57 = vld [vmem:[%s1885_s1 + $0x108] sm:$0xff]  }
  0x1d   : > { %1387 = vmatpush3.bf16.msra.mxu0 %v1521_v17  ;;  %v1562_v51 = vld [vmem:[%s1885_s1 + $0x180] sm:$0xff]   ;;  %v1567_v54 = vld [vmem:[%s1776_s22 + $0x14] ss:$28 sps:$4 sm:$0xff]   ;;  %v1570_v61 = vld [vmem:[%s1776_s22 + $0x4c] ss:$28 sps:$4 sm:$0xff]  }
  0x1e   : > { %1388 = vmatprep.subr.bf16.mxu0 %v1524_v20  ;;  %v1568_v55 = vld [vmem:[%s1776_s22 + $0x18] ss:$28 sps:$4 sm:$0xff]   ;;  %v1569_v56 = vld [vmem:[%s1776_s22 + $0x50] ss:$28 sps:$4 sm:$0xff]   ;;  %v1563_v58 = vld [vmem:[%s1885_s1 + $0x140] sm:$0xff]  }
  0x1f   : > { %1415 = vmatpush3.bf16.msra.mxu1 %v1523_v19  ;;  %v1564_v59 = vld [vmem:[%s1885_s1 + $0x100] sm:$0xff]   ;;  %v1565_v60 = vld [vmem:[%s1776_s22 + $0x10] ss:$28 sps:$4 sm:$0xff]  }
  0x20   : > { %1416 = vmatprep.subr.bf16.mxu1 %v1526_v22  ;;  %v1572_v62 = vld [vmem:[%s1776_s22 + $0x48] ss:$28 sps:$4 sm:$0xff]   ;;  %v1292_v17 = vld [vmem:[%s1886_s2] ss:$0 sm:$0xff] }
  0x21   : > { %1389 = vmatpush3.bf16.msra.mxu0 %v1525_v21  ;;  %v1573_v63 = vld [vmem:[%s1887_s3 + $0x8] sm:$0xff]   ;;  %v1574_v0 = vld [vmem:[%s1887_s3] sm:$0xff]  }
  0x22   : > { %1390 = vmatprep.subr.bf16.mxu0 %v1528_v24 }
  0x23   : > { %1417 = vmatpush3.bf16.msra.mxu1 %v1527_v23 }
  0x24   : > { %1418 = vmatprep.subr.bf16.mxu1 %v1530_v26 }
  0x25   : > { %1391 = vmatpush3.bf16.msra.mxu0 %v1529_v25 }
  0x26   : > { %1392 = vmatprep.subr.bf16.mxu0 %v1532_v28 }
  0x27   : > { %1419 = vmatpush3.bf16.msra.mxu1 %v1531_v27 }
  0x28   : > { %1420 = vmatprep.subr.bf16.mxu1 %v1534_v30 }
  0x29   : > { %1393 = vmatpush3.bf16.msra.mxu0 %v1533_v29 }
  0x2a   : > { %1434 = vmatprep.subr.bf16.mxu0 %v1539_v34 }
  0x2b   : > { %1421 = vmatpush3.bf16.msra.mxu1 %v1538_v33 }
  0x2c   : > { %811 = vmatmul.mubr.bf16.vlgmr.msra.gmra.mxu0 %v1535_v31  ;;  %1473 = vmatprep.subr.bf16.mxu1 %v1562_v51 }
  0x2d   : > { %1435 = vmatpush3.bf16.msra.mxu0 %v1543_v37  ;;  %818 = vmatprep.mubr.bf16.mxu0 %v1551_v44 }
  0x2e   : > { %860 = vmatmul.mubr.bf16.vlgmr.msra.gmra.mxu1 %v1540_v35  ;;  %1436 = vmatprep.subr.bf16.mxu0 %v1544_v38 }
  0x2f   : > { %867 = vmatprep.mubr.bf16.mxu1 %v1555_v47  ;;  %1474 = vmatpush3.bf16.msra.mxu1 %v1562_v51 }
  0x30   : > { %1479 = vmatprep.subr.bf16.mxu1 %v1573_v63 }
  0x31   : > { %1437 = vmatpush3.bf16.msra.mxu0 %v1545_v39 }
  0x32   : > { %1438 = vmatprep.subr.bf16.mxu0 %v1546_v40 }
  0x34   : > { %819 = vmatmul.mubr.bf16.gmra.mxu0 %v1554_v46 }
  0x35   : > { %1439 = vmatpush3.bf16.msra.mxu0 %v1547_v41  ;;  %908 = vmatprep.mubr.bf16.mxu0 %v1567_v54 }
  0x36   : > { %1440 = vmatprep.subr.bf16.mxu0 %v1548_v42  ;;  %868 = vmatmul.mubr.bf16.gmra.mxu1 %v1557_v48 }
  0x37   : > { %1475 = vmatprep.mubr.msk.bf16.mxu1 %vm771_vm0, %v1568_v55 }
  0x39   : > { %1441 = vmatpush3.bf16.msra.mxu0 %v1549_v43 }
  0x3a   : > { %1442 = vmatprep.subr.bf16.mxu0 %v1550_v45 }
  0x3d   : > { %1443 = vmatpush3.bf16.msra.mxu0 %v1553_v49 }
  0x3e   : > { %1444 = vmatprep.subr.bf16.mxu0 %v1558_v50  ;;  %1476 = vmatmul.mubr.msk.bf16.vlgmr.msra.gmra.mxu1 %vm771_vm0, %v1569_v56 }
  0x3f   : > { %1480 = vmatpush3.bf16.msra.mxu1 %v1573_v63 }
  0x40   : > { %1481 = vmatprep.subr.bf16.mxu1 %v1574_v0 }
  0x41   : > { %1445 = vmatpush3.bf16.msra.mxu0 %v1559_v52 }
  0x42   : > { %1446 = vmatprep.subr.bf16.mxu0 %v1560_v53 }
  0x43   : > { %1482 = vmatpush3.bf16.msra.mxu1 %v1574_v0 }
  0x45   : > { %1447 = vmatpush3.bf16.msra.mxu0 %v1561_v57 }
  0x46   : > { %1448 = vmatprep.subr.bf16.mxu0 %v1563_v58 }
  0x49   : > { %1449 = vmatpush3.bf16.msra.mxu0 %v1564_v59 }
  0x4c   : > { %909 = vmatmul.mubr.bf16.vlgmr.msra.gmra.mxu0 %v1565_v60 }
  0x4d   : > { %916 = vmatprep.mubr.bf16.mxu0 %v1570_v61 }
  0x54   : > { %917 = vmatmul.mubr.bf16.gmra.mxu0 %v1572_v62 }
  0xec   : > { %v1394_v2 = vpop.f32.mrf.mxu0 }
  0xee   : > { %v1422_v1 = vpop.f32.mrf.mxu1  ;;  %v1395_v4 = vpop.f32.mrf.mxu0 }
  0xef   : > { %v1396_v16 = vadd.f32 %v1395_v4, %v1394_v2 }
  0xf0   : > { %v1423_v3 = vpop.f32.mrf.mxu1  ;;  %v1397_v6 = vpop.f32.mrf.mxu0 }
  0xf1   : > { %v813_v20 = vadd.f32 %v1396_v16, %v1292_v17  ;;  %v1424_v21 = vadd.f32 %v1423_v3, %v1422_v1 }
  0xf2   : > { %v1425_v5 = vpop.f32.mrf.mxu1  ;;  %v1398_v9 = vpop.f32.mrf.mxu0 }
  0xf3   : > { %v1399_v22 = vadd.f32 %v1398_v9, %v1397_v6  ;;  %v862_v27 = vadd.f32 %v1424_v21, %v813_v20 }
  0xf4   : > { %v1426_v7 = vpop.f32.mrf.mxu1  ;;  %v1400_v10 = vpop.f32.mrf.mxu0 }
  0xf5   : > { %v816_v28 = vadd.f32 %v1399_v22, %v1292_v17  ;;  %v1427_v29 = vadd.f32 %v1426_v7, %v1425_v5 }
  0xf6   : > { %v1428_v8 = vpop.f32.mrf.mxu1  ;;  %v1401_v12 = vpop.f32.mrf.mxu0 }
  0xf7   : > { %v1402_v25 = vadd.f32 %v1401_v12, %v1400_v10  ;;  %v865_v38 = vadd.f32 %v1427_v29, %v816_v28  ;;  %v1575_v12 = vld [vmem:[%s1889_s5 + $0x8] sm:$0xff]  }
  0xf8   : > { %v1429_v11 = vpop.f32.mrf.mxu1  ;;  %v1403_v14 = vpop.f32.mrf.mxu0  ;;  %1487 = vmatprep.subr.bf16.mxu1 %v1575_v12 }
  0xf9   : > { %v821_v34 = vadd.f32 %v1402_v25, %v1292_v17  ;;  %v1430_v35 = vadd.f32 %v1429_v11, %v1428_v8 }
  0xfa   : > { %v1431_v13 = vpop.f32.mrf.mxu1  ;;  %v1404_v19 = vpop.f32.mrf.mxu0 }
  0xfb   : > { %v1405_v36 = vadd.f32 %v1404_v19, %v1403_v14  ;;  %v870_v45 = vadd.f32 %v1430_v35, %v821_v34  ;;  %v1362_v14 = vld [vmem:[%s1888_s4] ss:$0 sm:$0xff] }
  0xfc   : > { %v1432_v15 = vpop.f32.mrf.mxu1 }
  0xfd   : > { %v824_v46 = vadd.f32 %v1405_v36, %v1292_v17  ;;  %v1433_v48 = vadd.f32 %v1432_v15, %v1431_v13  ;;  %v1576_v13 = vld [vmem:[%s1889_s5] sm:$0xff]  }
  0xfe   : > { %v1477_v18 = vpop.f32.mrf.mxu1 }
  0xff   : > { %v873_v55 = vadd.f32 %v1433_v48, %v824_v46 }
 0x100   : > { %v959_v24 = vpop.f32.mrf.mxu1 }
 0x102   : > { %v1478_v32 = vpop.f32.mrf.mxu1 }
 0x104   : > { %v962_v42 = vpop.f32.mrf.mxu1 }
 0x10c   : > { %v1450_v23 = vpop.f32.mrf.mxu0 }
 0x10e   : > { %v1451_v26 = vpop.f32.mrf.mxu0 }
 0x10f   : > { %v1452_v30 = vadd.f32 %v1451_v26, %v1450_v23 }
 0x110   : > { %v1453_v31 = vpop.f32.mrf.mxu0 }
 0x111   : > { %v911_v33 = vadd.f32 %v1452_v30, %v862_v27 }
 0x112   : > { %v1454_v37 = vpop.f32.mrf.mxu0 }
 0x113   : > { %v1455_v39 = vadd.f32 %v1454_v37, %v1453_v31  ;;  %v960_v40 = vadd.f32 %v959_v24, %v911_v33 }
 0x114   : > { %v1456_v41 = vpop.f32.mrf.mxu0 }
 0x115   : > { %v1358_v43 = vmul.f32 -1.442695, %v960_v40  ;;  %v914_v44 = vadd.f32 %v1455_v39, %v865_v38 }
 0x116   : > { %v1457_v47 = vpop.f32.mrf.mxu0 }
 0x117   : > { %1577 = vpow2.f32 %v1358_v43  ;;  %v1458_v49 = vadd.f32 %v1457_v47, %v1456_v41  ;;  %v963_v50 = vadd.f32 %v962_v42, %v914_v44  ;;  %v1371_v41 = vld [vmem:[%s1890_s6] ss:$0 sm:$0xff] }
 0x118   : > { %v1459_v51 = vpop.f32.mrf.mxu0 }
 0x119   : > { %v919_v52 = vadd.f32 %v1458_v49, %v870_v45  ;;  %v1359_v53 = vmul.f32 -1.442695, %v963_v50 }
 0x11a   : > { %v1460_v54 = vpop.f32.mrf.mxu0 }
 0x11b   : > { %v968_v56 = vadd.f32 %v1477_v18, %v919_v52  ;;  %1579 = vpow2.f32 %v1359_v53  ;;  %v1461_v57 = vadd.f32 %v1460_v54, %v1459_v51 }
 0x11d   : > { %v1360_v58 = vmul.f32 -1.442695, %v968_v56  ;;  %v922_v59 = vadd.f32 %v1461_v57, %v873_v55 }
 0x11f   : > { %1581 = vpow2.f32 %v1360_v58  ;;  %v971_v60 = vadd.f32 %v1478_v32, %v922_v59 }
 0x121   : > { %v1361_v61 = vmul.f32 -1.442695, %v971_v60 }
 0x123   : > { %1583 = vpow2.f32 %v1361_v61 }
 0x124   : > { %v1578_v62 = vpop.eup %1577 }
 0x125   : > { %v986_v63 = vadd.f32 1.0, %v1578_v62 }
 0x127   : > { %1585 = vrcp.f32 %v986_v63 }
 0x128   : > { %v1580_v0 = vpop.eup %1579 }
 0x129   : > { %v987_v1 = vadd.f32 1.0, %v1580_v0 }
 0x12b   : > { %1587 = vrcp.f32 %v987_v1 }
 0x12c   : > { %v1582_v2 = vpop.eup %1581 }
 0x12d   : > { %v988_v3 = vadd.f32 1.0, %v1582_v2 }
 0x12f   : > { %1589 = vrcp.f32 %v988_v3 }
 0x130   : > { %v1584_v4 = vpop.eup %1583 }
 0x131   : > { %v989_v5 = vadd.f32 1.0, %v1584_v4 }
 0x133   : > { %1591 = vrcp.f32 %v989_v5 }
 0x134   : > { %v1586_v6 = vpop.eup %1585 }
 0x138   : > { %v1588_v7 = vpop.eup %1587 }
 0x139   : > { %v998_v8 = vpack.c.bf16 %v1588_v7, %v1586_v6 }
 0x13b   : > { %1483 = vmatprep.mubr.msk.bf16.mxu1 %vm1023_vm1, %v998_v8 }
 0x13c   : > { %v1590_v9 = vpop.eup %1589 }
 0x140   : > { %v1592_v10 = vpop.eup %1591 }
 0x141   : > { %v999_v11 = vpack.c.bf16 %v1592_v10, %v1590_v9 }
 0x143   : > { %1484 = vmatmul.mubr.msk.bf16.vlgmr.msra.gmra.mxu1 %vm1023_vm1, %v999_v11 }
 0x144   : > { %1488 = vmatpush3.bf16.msra.mxu1 %v1575_v12 }
 0x145   : > { %1489 = vmatprep.subr.bf16.mxu1 %v1576_v13 }
 0x148   : > { %1490 = vmatpush3.bf16.msra.mxu1 %v1576_v13 }
 0x203   : > { %v1485_v15 = vpop.f32.mrf.mxu1 }
 0x204   : > { %v1073_v16 = vadd.f32 %v1485_v15, %v1362_v14 }
 0x205   : > { %v1064_v17 = vpop.f32.mrf.mxu1 }
 0x206   : > { %v1065_v18 = vadd.f32 %v1362_v14, %v1064_v17  ;;  %v1369_v19 = vmul.f32 -1.442695, %v1073_v16 }
 0x207   : > { %v1486_v20 = vpop.f32.mrf.mxu1 }
 0x208   : > { %v1367_v21 = vmul.f32 -1.442695, %v1065_v18  ;;  %v1076_v22 = vadd.f32 %v1486_v20, %v1362_v14 }
 0x209   : > { %v1067_v23 = vpop.f32.mrf.mxu1 }
 0x20a   : > { %1593 = vpow2.f32 %v1367_v21  ;;  %v1370_v24 = vmul.f32 -1.442695, %v1076_v22  ;;  %v1068_v25 = vadd.f32 %v1362_v14, %v1067_v23 }
 0x20b   : > { %1595 = vpow2.f32 %v1369_v19 }
 0x20c   : > { %1597 = vpow2.f32 %v1370_v24  ;;  %v1368_v26 = vmul.f32 -1.442695, %v1068_v25 }
 0x20e   : > { %1599 = vpow2.f32 %v1368_v26 }
 0x217   : > { %v1594_v27 = vpop.eup %1593 }
 0x218   : > { %v1596_v28 = vpop.eup %1595  ;;  %v1091_v29 = vadd.f32 1.0, %v1594_v27 }
 0x219   : > { %v1598_v30 = vpop.eup %1597  ;;  %v1093_v33 = vadd.f32 1.0, %v1596_v28 }
 0x21a   : > { %v1094_v31 = vadd.f32 1.0, %v1598_v30  ;;  %1601 = vrcp.f32 %v1091_v29 }
 0x21b   : > { %v1600_v32 = vpop.eup %1599 }
 0x21c   : > { %v1092_v34 = vadd.f32 1.0, %v1600_v32  ;;  %1603 = vrcp.f32 %v1094_v31 }
 0x21e   : > { %1605 = vrcp.f32 %v1092_v34 }
 0x21f   : > { %1607 = vrcp.f32 %v1093_v33 }
 0x227   : > { %v1602_v35 = vpop.eup %1601 }
 0x229   : > { %v1604_v36 = vpop.eup %1603 }
 0x22b   : > { %v1606_v37 = vpop.eup %1605 }
 0x22c   : > { %v1608_v38 = vpop.eup %1607  ;;  %v1103_v39 = vpack.c.bf16 %v1606_v37, %v1602_v35 }
 0x22d   : > { %v1104_v40 = vpack.c.bf16 %v1604_v36, %v1608_v38 }
 0x22e   : > { %1491 = vmatprep.mubr.msk.bf16.mxu1 %vm1023_vm1, %v1103_v39 }
 0x22f   : > { %1492 = vmatmul.mubr.msk.bf16.vlgmr.msra.gmra.mxu1 %vm1023_vm1, %v1104_v40 }
 0x2ef   : > { %v1493_v42 = vpop.f32.mrf.mxu1 }
 0x2f0   : > { %v1177_v43 = vadd.f32 %v1493_v42, %v1371_v41 }
 0x2f1   : > { %v1168_v44 = vpop.f32.mrf.mxu1 }
 0x2f2   : > { %v1169_v45 = vadd.f32 %v1371_v41, %v1168_v44  ;;  %1187 = vmax.xlane.f32.xlu1 %v1177_v43 }
 0x2f3   : > { %v1494_v46 = vpop.f32.mrf.mxu1 }
 0x2f4   : > { %v1180_v47 = vadd.f32 %v1494_v46, %v1371_v41  ;;  %1183 = vmax.xlane.f32.xlu0 %v1169_v45 }
 0x2f5   : > { %v1171_v48 = vpop.f32.mrf.mxu1 }
 0x2f6   : > { %v1172_v49 = vadd.f32 %v1371_v41, %v1171_v48  ;;  %1189 = vmax.xlane.f32.xlu1 %v1180_v47 }
 0x2f8   : > { %1185 = vmax.xlane.f32.xlu0 %v1172_v49 }
 0x37b   : > { %v1188_v50 = vpop.xlane.xlu1 %1187 }
 0x37c   : > { %v1193_v51 = vsub.f32 %v1177_v43, %v1188_v50 }
 0x37d   : > { %v1184_v52 = vpop.xlane.xlu0 %1183 }
 0x37e   : > { %v1191_v53 = vsub.f32 %v1169_v45, %v1184_v52  ;;  %v1199_v56 = vmul.f32 1.442695, %v1193_v51 }
 0x37f   : > { %v1190_v54 = vpop.xlane.xlu1 %1189 }
 0x380   : > { %v1195_v55 = vmul.f32 1.442695, %v1191_v53  ;;  %v1194_v58 = vsub.f32 %v1180_v47, %v1190_v54 }
 0x381   : > { %v1186_v57 = vpop.xlane.xlu0 %1185 }
 0x382   : > { %1609 = vpow2.f32 %v1195_v55  ;;  %v1192_v59 = vsub.f32 %v1172_v49, %v1186_v57  ;;  %v1201_v61 = vmul.f32 1.442695, %v1194_v58 }
 0x383   : > { %1611 = vpow2.f32 %v1199_v56 }
 0x384   : > { %v1197_v60 = vmul.f32 1.442695, %v1192_v59 }
 0x386   : > { %1613 = vpow2.f32 %v1197_v60 }
 0x387   : > { %1615 = vpow2.f32 %v1201_v61 }
 0x38f   : > { %v1610_v62 = vpop.eup %1609 }
 0x390   : > { %1203 = vadd.xlane.f32.xlu0 %v1610_v62  ;;  %v1612_v63 = vpop.eup %1611 }
 0x393   : > { %v1614_v0 = vpop.eup %1613 }
 0x394   : > { %1207 = vadd.xlane.f32.xlu0 %v1612_v63  ;;  %1205 = vadd.xlane.f32.xlu1 %v1614_v0  ;;  %v1616_v1 = vpop.eup %1615 }
 0x398   : > { %1209 = vadd.xlane.f32.xlu1 %v1616_v1 }
 0x419   : > { %v1204_v2 = vpop.xlane.xlu0 %1203 }
 0x41a   : > { %1617 = vlog2.f32 %v1204_v2 }
 0x41d   : > { %v1206_v3 = vpop.xlane.xlu1 %1205  ;;  %v1208_v4 = vpop.xlane.xlu0 %1207 }
 0x41e   : > { %1619 = vlog2.f32 %v1206_v3 }
 0x41f   : > { %1621 = vlog2.f32 %v1208_v4 }
 0x421   : > { %v1210_v5 = vpop.xlane.xlu1 %1209 }
 0x422   : > { %1623 = vlog2.f32 %v1210_v5 }
 0x427   : > { %v1618_v6 = vpop.eup %1617 }
 0x428   : > { %v1212_v7 = vmul.f32 0.6931472, %v1618_v6 }
 0x42a   : > { %v1219_v8 = vsub.f32 %v1191_v53, %v1212_v7 }
 0x42b   : > { %v1620_v9 = vpop.eup %1619 }
 0x42c   : > { %v1622_v10 = vpop.eup %1621  ;;  %1223 = vst [vmem:[%s283_s25] sm:$0xff] %v1219_v8  ;;  %v1214_v11 = vmul.f32 0.6931472, %v1620_v9 }
 0x42d   : > { %v1216_v12 = vmul.f32 0.6931472, %v1622_v10 }
 0x42e   : > { %v1220_v13 = vsub.f32 %v1192_v59, %v1214_v11 }
 0x42f   : > { %v1624_v14 = vpop.eup %1623  ;;  %v1221_v15 = vsub.f32 %v1193_v51, %v1216_v12 }
 0x430   : > { %1224 = vst [vmem:[%s283_s25 + $0x8] sm:$0xff] %v1220_v13  ;;  %v1218_v16 = vmul.f32 0.6931472, %v1624_v14 }
 0x431   : > { %1225 = vst [vmem:[%s283_s25 + $0x10] sm:$0xff] %v1221_v15 }
 0x432   : > { %v1222_v17 = vsub.f32 %v1194_v58, %v1218_v16 }
 0x434   : > { %1226 = vst [vmem:[%s283_s25 + $0x18] sm:$0xff] %v1222_v17 }
 0x435 PF: > { %s17_s24 = sadd.s32 1, %s1631_s24  }
 0x436   : > { %p14_p4 = scmp.ge.s32.totalorder %s17_s24, 4  }
 0x438   :  { %16 = sbr.rel (!%p14_p4) target bundleno = 1 (0x1), region = 78 }

</bundles_post_ra>
